<compile_context>
chip_gen: v6e
topology: v6e:2x2x1
jax: 0.10.0
libtpu: 0.0.40
codegen_flags: <defaults>
</compile_context>

<pallas_src>
import jax
import jax.numpy as jnp
from jax.experimental import pallas as pl
from jax.experimental.pallas import tpu as pltpu


def _linreg_kernel(x_ref, w_ref, b_ref, o_ref):
    # x_ref: (2, TB, F) f32 VMEM  -- [0]=guide rows, [1]=target rows (flattened A*C)
    # w_ref: (2, F)     f32 VMEM  -- row 0 = guide weights, row 1 = target weights
    # b_ref: (1,)       f32 SMEM  -- bias scalar
    # o_ref: (TB, 1)    f32 VMEM
    xg = x_ref[0]                  # (TB, F)
    xt = x_ref[1]                  # (TB, F)
    wg = w_ref[0:1, :]             # (1, F), broadcasts over rows
    wt = w_ref[1:2, :]             # (1, F)
    # VPU multiply/add + lane reduction; no MXU involvement.
    s = jnp.sum(xg * wg + xt * wt, axis=-1, keepdims=True)   # (TB, 1) f32
    o_ref[...] = s + b_ref[0]


def linear_regression_forward(x, weight, bias, *, block_b=1024):
    """Forward pass matching the PyTorch module.

    x      : (2, B, A, C) float32   (x[0]=guide, x[1]=target; A*2C == 184)
    weight : (1, 184) float32       (nn.Linear layout: (out_features, in_features))
    bias   : (1,) float32
    returns: (B, 1) float32
    """
    two, B, A, C = x.shape
    assert two == 2
    F = A * C
    assert weight.shape == (1, 2 * F)

    # Free, layout-preserving reshape; no concatenate, no extra HBM pass.
    x_r = x.reshape(2, B, F).astype(jnp.float32)

    # Permute the weight once so the interleaved cat(dim=2)+view ordering
    # [g(a=0), t(a=0), g(a=1), t(a=1), ...] splits into guide/target halves:
    #   w_stacked[0, a*C + c] = weight[0, a*2C + c]       (guide)
    #   w_stacked[1, a*C + c] = weight[0, a*2C + C + c]   (target)
    w_stacked = (
        weight.reshape(A, 2, C).transpose(1, 0, 2).reshape(2, F).astype(jnp.float32)
    )
    b = bias.reshape(1).astype(jnp.float32)

    # Batch tile: one full block for small B; otherwise TB rows per grid step
    # (TB multiple of 8 for sublane alignment). Ragged last blocks are fine:
    # OOB rows are undefined on load and dropped on store.
    tb = B if B <= block_b else block_b
    grid = (pl.cdiv(B, tb),)

    return pl.pallas_call(
        _linreg_kernel,
        out_shape=jax.ShapeDtypeStruct((B, 1), jnp.float32),
        grid=grid,
        in_specs=[
            pl.BlockSpec((2, tb, F), lambda i: (0, i, 0)),
            pl.BlockSpec((2, F), lambda i: (0, 0)),              # same block every step
            pl.BlockSpec(memory_space=pltpu.MemorySpace.SMEM),   # scalar bias in SMEM
        ],
        out_specs=pl.BlockSpec((tb, 1), lambda i: (i, 0)),
        compiler_params=pltpu.CompilerParams(
            dimension_semantics=("parallel",),
        ),
    )(x_r, w_stacked, b)


if __name__ == "__main__":
    key = jax.random.PRNGKey(0)
    k_x, k_w, k_b = jax.random.split(key, 3)

    # Shapes: guide/target each (B, A, C) with A*2C = 184  ->  A=4, C=23.
    B, A, C = 2, 4, 23
    x = jax.random.normal(k_x, (2, B, A, C), dtype=jnp.float32)

    # Deterministic nn.Linear(184, 1)-style init: U(-1/sqrt(184), 1/sqrt(184)).
    bound = 1.0 / jnp.sqrt(184.0)
    weight = jax.random.uniform(k_w, (1, 184), minval=-bound, maxval=bound,
                                dtype=jnp.float32)
    bias = jax.random.uniform(k_b, (1,), minval=-bound, maxval=bound,
                              dtype=jnp.float32)

    out = jax.block_until_ready(linear_regression_forward(x, weight, bias))

    # Reference: exact PyTorch semantics (cat along dim=2, flatten, Linear).
    feats_ref = jnp.concatenate((x[0], x[1]), axis=2).reshape(B, -1)
    ref = feats_ref @ weight.T + bias
    assert out.shape == (B, 1)
    assert jnp.allclose(out, ref, atol=1e-5, rtol=1e-5)

    # Also exercise the batch-tiled grid path (multiple grid steps).
    B2 = 24
    x2 = jax.random.normal(jax.random.PRNGKey(1), (2, B2, A, C), dtype=jnp.float32)
    out2 = jax.block_until_ready(
        linear_regression_forward(x2, weight, bias, block_b=8))
    ref2 = jnp.concatenate((x2[0], x2[1]), axis=2).reshape(B2, -1) @ weight.T + bias
    assert out2.shape == (B2, 1)
    assert jnp.allclose(out2, ref2, atol=1e-5, rtol=1e-5)

    print("KERNEL_OK")
</pallas_src>

<mosaic_0001>
module attributes {stable_mosaic.version = 11 : i64} {
  func.func @_linreg_kernel(%arg0: i32, %arg1: memref<2x2x92xf32, #tpu.memory_space<vmem>>, %arg2: memref<2x92xf32, #tpu.memory_space<vmem>>, %arg3: memref<1xf32, #tpu.memory_space<smem>>, %arg4: memref<2x1xf32, #tpu.memory_space<vmem>>) attributes {dimension_semantics = [#tpu.dimension_semantics<parallel>], iteration_bounds = array<i64: 1>, scalar_prefetch = 0 : i64, scratch_operands = 0 : i64, tpu.core_type = #tpu.core_type<tc>, window_params = [{transform_indices = @transform_0, window_bounds = array<i64: 2, 2, 92>}, {pipeline_mode = #tpu.pipeline_mode<synchronous>, transform_indices = @transform_1, window_bounds = array<i64: 2, 92>}, {transform_indices = @transform_2, window_bounds = array<i64: 1>}, {transform_indices = @transform_3, window_bounds = array<i64: 2, 1>}]} {
    %c0 = arith.constant 0 : index
    %c0_0 = arith.constant 0 : index
    %c0_1 = arith.constant 0 : index
    %0 = vector.load %arg1[%c0, %c0_0, %c0_1] : memref<2x2x92xf32, #tpu.memory_space<vmem>>, vector<1x2x92xf32>
    %1 = vector.shape_cast %0 : vector<1x2x92xf32> to vector<2x92xf32>
    %c1 = arith.constant 1 : index
    %c0_2 = arith.constant 0 : index
    %c0_3 = arith.constant 0 : index
    %2 = vector.load %arg1[%c1, %c0_2, %c0_3] : memref<2x2x92xf32, #tpu.memory_space<vmem>>, vector<1x2x92xf32>
    %3 = vector.shape_cast %2 : vector<1x2x92xf32> to vector<2x92xf32>
    %c0_4 = arith.constant 0 : index
    %c0_5 = arith.constant 0 : index
    %4 = vector.load %arg2[%c0_4, %c0_5] : memref<2x92xf32, #tpu.memory_space<vmem>>, vector<1x92xf32>
    %c1_6 = arith.constant 1 : index
    %c0_7 = arith.constant 0 : index
    %5 = vector.load %arg2[%c1_6, %c0_7] : memref<2x92xf32, #tpu.memory_space<vmem>>, vector<1x92xf32>
    %6 = vector.broadcast %4 : vector<1x92xf32> to vector<2x92xf32>
    %7 = arith.mulf %1, %6 : vector<2x92xf32>
    %8 = vector.broadcast %5 : vector<1x92xf32> to vector<2x92xf32>
    %9 = arith.mulf %3, %8 : vector<2x92xf32>
    %10 = arith.addf %7, %9 : vector<2x92xf32>
    %cst = arith.constant dense<0.000000e+00> : vector<2xf32>
    %11 = vector.multi_reduction <add>, %10, %cst [1] : vector<2x92xf32> to vector<2xf32>
    %12 = vector.shape_cast %11 : vector<2xf32> to vector<2x1xf32>
    %c0_8 = arith.constant 0 : index
    %13 = memref.load %arg3[%c0_8] : memref<1xf32, #tpu.memory_space<smem>>
    %14 = vector.broadcast %13 : f32 to vector<2x1xf32>
    %15 = arith.addf %12, %14 : vector<2x1xf32>
    %c0_9 = arith.constant 0 : index
    %c0_10 = arith.constant 0 : index
    %16 = vector.load %arg4[%c0_9, %c0_10] : memref<2x1xf32, #tpu.memory_space<vmem>>, vector<2x1xf32>
    tpu.vector_store %arg4[%c0_9, %c0_10], %15 {strides = array<i32>} : memref<2x1xf32, #tpu.memory_space<vmem>>, vector<2x1xf32>,
    return
  }
  func.func @transform_0(%arg0: i32) -> (i32, i32, i32) {
    %c0_i32 = arith.constant 0 : i32
    %c0_i32_0 = arith.constant 0 : i32
    %c0_i32_1 = arith.constant 0 : i32
    return %c0_i32, %arg0, %c0_i32_0 : i32, i32, i32
  }
  func.func @transform_1(%arg0: i32) -> (i32, i32) {
    %c0_i32 = arith.constant 0 : i32
    %c0_i32_0 = arith.constant 0 : i32
    %c0_i32_1 = arith.constant 0 : i32
    return %c0_i32, %c0_i32_0 : i32, i32
  }
  func.func @transform_2(%arg0: i32) -> i32 {
    %c0_i32 = arith.constant 0 : i32
    %c0_i32_0 = arith.constant 0 : i32
    return %c0_i32 : i32
  }
  func.func @transform_3(%arg0: i32) -> (i32, i32) {
    %c0_i32 = arith.constant 0 : i32
    %c0_i32_0 = arith.constant 0 : i32
    return %arg0, %c0_i32 : i32, i32
  }
}

</mosaic_0001>

<bundles_post_ra>
// kernel: tpu_custom_call.1
= control target key start
LH: loop header
LB: loop body
LE: loop exit
PB: predicated region body
PF: predicated region fallthrough
CT: control target
= control target key end

     0   :  { %9 = vsyncpa [#allocation4], 0  ;;  %s86_s12 = smov [#allocation3]   ;;  %s124_s0 = inlined_call_operand.hbm [shape: f32[2,2,92], index: 0, kind: input, shape index: {}]   ;;  %s125_s1 = inlined_call_operand.vmem [shape: f32[2,92], index: 1, kind: input, shape index: {}]   ;;  %s126_s2 = inlined_call_operand.<no memory space> [shape: f32[1], index: 2, kind: input, shape index: {}]   ;;  %s127_s3 = inlined_call_operand.vmem [shape: f32[2,1], index: 3, kind: output, shape index: {}]  }
   0x1   :  { %s15_s13 = sshll.u32 %s86_s12, 4  ;;  %s16_s13 = int_to_ptr.vmem [resolvable:$true] %s15_s13 }
   0x2   :  { %s72_s14 = scalar_lea.vmem %s16_s13, 64  ;;  %p77_p1 = scmp.lt.s32.totalorder %s16_s13, %s16_s13 }
   0x3   :  { %p73_p0 = scmp.ne.s32.totalorder %s16_s13, %s72_s14  ;;  %p78_p2 = scmp.lt.s32.totalorder %s72_s14, %s72_s14 }
   0x5   :  { %p79_p3 = por %p78_p2, %p77_p1 }
   0x7   :  { %p80_p4 = pnand %p79_p3, %p73_p0 }
   0x9   :  { %83 = shalt.err (!%p80_p4)
}
   0xa   :  { %s87_s15 = smov 32   ;;  %s88_s16 = smov 2  }
   0xb   :  { %21 = dma.hbm_to_vmem [thread:$0]  %s124_s0, 64, %s16_s13, [#allocation4], %s87_s15, %s87_s15, %s88_s16  }
   0xc   :  { %84 = dma.done.wait [#allocation4], 64  }
   0xd   :  { %85 = vsyncadd [#allocation4], 4294967232  ;;  %v29_v0 = vld [vmem:[#allocation3] sm:$0x3]  ;;  %v31_v1 = vld [vmem:[#allocation3 + $0x2] sm:$0x3]  ;;  %v50_v8 = vstv %s126_s2 }
   0xe   :  { %v59_v2 = vld [vmem:[%s125_s1] ss:$0 sm:$0xff]  ;;  %v60_v3 = vld [vmem:[%s125_s1 + $0x1] ss:$0 sm:$0xff]  ;;  %vm45_vm0 = vcmask 746496   ;;  %vm52_vm1 = vcmask 1024  }
   0xf   :  { %v38_v4 = vmul.f32 %v59_v2, %v29_v0  ;;  %v43_v5 = vmul.f32 %v60_v3, %v31_v1 }
  0x11   :  { %v44_v6 = vadd.f32 %v43_v5, %v38_v4 }
  0x13   :  { %v46_v7 = vsel %vm45_vm0, %v44_v6, 0.0 }
  0x14   :  { %47 = vadd.xlane.f32.xlu0 %v46_v7 }
  0x9d   :  { %v48_v9 = vpop.xlane.xlu0 %47 }
  0x9e   :  { %v51_v10 = vadd.f32 %v50_v8, %v48_v9 }
  0xa0   :  { %53 = vst.msk [vmem:[%s127_s3] sm:$0x3] %vm52_vm1, %v51_v10 }
  0xa1   :  { %58 = vsyncpa [#allocation4], 1 }

</bundles_post_ra>
